<compile_context>
chip_gen: v5e
topology: v5e:2x2
jax: 0.10.0
libtpu: 0.0.40
codegen_flags: <defaults>
</compile_context>

<pallas_src>
import math

import jax
import jax.numpy as jnp
from jax.experimental import pallas as pl
from jax.experimental.pallas import tpu as pltpu


def _projection_kernel(lbl_ref, img_ref, wl_ref, wi_ref, lab_out_ref, img_out_ref):
    # Accumulate in f32 regardless of input dtype (inputs may be bf16).
    wl = wl_ref[...].astype(jnp.float32)              # [1, L]
    wi = wi_ref[...].astype(jnp.float32)              # [1, H]
    lbl = lbl_ref[...].astype(jnp.float32)            # [tr, L]
    img = img_ref[...].astype(jnp.float32)            # [tr, H]
    # VPU multiply + XLU lane reduce; no MXU for width-1 outputs.
    lab_out_ref[...] = jnp.sum(lbl * wl, axis=-1, keepdims=True)   # [tr, 1]
    img_out_ref[...] = jnp.sum(img * wi, axis=-1, keepdims=True)   # [tr, 1]


def _gate_kernel(lab_ref, img_ref, out_ref):
    # [tm,1] + [1,tn] -> [tm,tn]: broadcast-add on the VPU, sigmoid on the EUP,
    # lane-dense unmasked stores.  Write-bound on v5e/v6e.
    # TODO(synk): on v7x (3.2 TB/s HBM) check the bundle dump; if the EUP slot
    # saturates before vst, switch to jnp.exp + pl.reciprocal(..., approx=True).
    logits = lab_ref[...] + img_ref[...]
    out_ref[...] = jax.nn.sigmoid(logits).astype(out_ref.dtype)


def _vmem_limit(tile_bytes, floor=8 << 20, cap=48 << 20):
    # Double-buffered tiles + 2x headroom, capped below v7x's 64 MiB physical.
    return int(max(floor, min(cap, 4 * tile_bytes)))


def regional_gate(pred_labels, regional_img_features, w_label, w_image,
                  *, tile_m=256, tile_n=1024, tile_r=256, out_dtype=jnp.float32):
    """RegionalGate forward.

    pred_labels:            [N, L]
    regional_img_features:  [N, H]
    w_label:                [1, L]   (nn.Linear(vocab_label_size, 1, bias=False).weight)
    w_image:                [1, H]   (nn.Linear(image_hidden_size, 1, bias=False).weight)
    returns gate:           [N, N], gate[i, j] = sigmoid(labels[i] + images[j])
    (out_dtype can be set to jnp.bfloat16 to halve the dominant N^2 writeback.)
    """
    N, L = pred_labels.shape
    N2, H = regional_img_features.shape
    assert N == N2, "region count must match"
    assert w_label.shape == (1, L) and w_image.shape == (1, H)

    in_bytes = jnp.dtype(pred_labels.dtype).itemsize
    out_bytes = jnp.dtype(out_dtype).itemsize

    # ---------------- pass 1: length-N projections (computed once) ----------
    tr = min(tile_r, N)
    proj_tile_bytes = tr * (L + H) * in_bytes + (L + H) * 4 + 2 * tr * 4
    labels_col, images_col = pl.pallas_call(
        _projection_kernel,
        out_shape=(jax.ShapeDtypeStruct((N, 1), jnp.float32),
                   jax.ShapeDtypeStruct((N, 1), jnp.float32)),
        grid_spec=pltpu.PrefetchScalarGridSpec(
            num_scalar_prefetch=0,
            grid=(pl.cdiv(N, tr),),
            in_specs=[
                pl.BlockSpec((tr, L), lambda i: (i, 0)),
                pl.BlockSpec((tr, H), lambda i: (i, 0)),
                pl.BlockSpec((1, L), lambda i: (0, 0)),   # lane-dense weight rows,
                pl.BlockSpec((1, H), lambda i: (0, 0)),   # resident across the grid
            ],
            out_specs=[
                pl.BlockSpec((tr, 1), lambda i: (i, 0)),
                pl.BlockSpec((tr, 1), lambda i: (i, 0)),
            ],
        ),
        compiler_params=pltpu.CompilerParams(
            dimension_semantics=("parallel",),
            vmem_limit_bytes=_vmem_limit(proj_tile_bytes),
        ),
    )(pred_labels, regional_img_features, w_label, w_image)

    # One tiny relayout (N floats) so the hot kernel reads a lane-major row and
    # never pays a per-tile sublane->lane move.
    images_row = images_col.reshape(1, N)

    # ---------------- pass 2: outer-sum + sigmoid over output tiles ---------
    tm = min(tile_m, N)
    tn = min(tile_n, N)                       # lane-dense: multiple of 128 when N >= tile_n
    gate_tile_bytes = tm * tn * out_bytes + (tm + tn) * 4
    gate = pl.pallas_call(
        _gate_kernel,
        out_shape=jax.ShapeDtypeStruct((N, N), out_dtype),
        grid_spec=pltpu.PrefetchScalarGridSpec(
            num_scalar_prefetch=0,
            grid=(pl.cdiv(N, tm), pl.cdiv(N, tn)),
            in_specs=[
                pl.BlockSpec((tm, 1), lambda i, j: (i, 0)),
                pl.BlockSpec((1, tn), lambda i, j: (0, j)),
            ],
            out_specs=pl.BlockSpec((tm, tn), lambda i, j: (i, j)),
        ),
        compiler_params=pltpu.CompilerParams(
            dimension_semantics=("parallel", "parallel"),
            vmem_limit_bytes=_vmem_limit(gate_tile_bytes),
        ),
    )(labels_col, images_row)
    return gate


def _reference(pred_labels, regional_img_features, w_label, w_image):
    labels = pred_labels.astype(jnp.float32) @ w_label.astype(jnp.float32).T      # [N, 1]
    images = (regional_img_features.astype(jnp.float32)
              @ w_image.astype(jnp.float32).T)[:, 0]                              # [N]
    return jax.nn.sigmoid(labels + images[None, :])                               # [N, N]


def _run_case(key, N, L, H, **tile_kwargs):
    k1, k2, k3, k4 = jax.random.split(key, 4)
    pred_labels = jax.random.normal(k1, (N, L), dtype=jnp.float32)
    regional_img_features = jax.random.normal(k2, (N, H), dtype=jnp.float32)
    # Deterministic init matching nn.Linear(in, 1, bias=False): weight [1, in],
    # uniform(-1/sqrt(in), 1/sqrt(in)).
    bl, bi = 1.0 / math.sqrt(L), 1.0 / math.sqrt(H)
    w_label = jax.random.uniform(k3, (1, L), minval=-bl, maxval=bl, dtype=jnp.float32)
    w_image = jax.random.uniform(k4, (1, H), minval=-bi, maxval=bi, dtype=jnp.float32)

    out = regional_gate(pred_labels, regional_img_features, w_label, w_image, **tile_kwargs)
    out = jax.block_until_ready(out)
    ref = _reference(pred_labels, regional_img_features, w_label, w_image)
    assert out.shape == (N, N)
    assert jnp.allclose(out, ref, atol=1e-5, rtol=1e-5), \
        f"mismatch: max err {float(jnp.max(jnp.abs(out - ref)))}"


if __name__ == "__main__":
    key = jax.random.PRNGKey(0)
    k_small, k_tiled = jax.random.split(key)

    # Small shapes consistent with the module's forward (scaled-down hidden).
    _run_case(k_small, N=8, L=28, H=32)

    # Larger case exercising the 2-D tiled grid / multi-block pipeline.
    _run_case(k_tiled, N=384, L=28, H=256, tile_m=128, tile_n=128, tile_r=128)

    print("KERNEL_OK")
</pallas_src>

<mosaic_0001>
module attributes {stable_mosaic.version = 11 : i64} {
  func.func @_projection_kernel(%arg0: i32, %arg1: memref<8x28xf32, #tpu.memory_space<vmem>>, %arg2: memref<8x32xf32, #tpu.memory_space<vmem>>, %arg3: memref<1x28xf32, #tpu.memory_space<vmem>>, %arg4: memref<1x32xf32, #tpu.memory_space<vmem>>, %arg5: memref<8x1xf32, #tpu.memory_space<vmem>>, %arg6: memref<8x1xf32, #tpu.memory_space<vmem>>) attributes {dimension_semantics = [#tpu.dimension_semantics<parallel>], iteration_bounds = array<i64: 1>, scalar_prefetch = 0 : i64, scratch_operands = 0 : i64, tpu.core_type = #tpu.core_type<tc>, window_params = [{transform_indices = @transform_0, window_bounds = array<i64: 8, 28>}, {transform_indices = @transform_1, window_bounds = array<i64: 8, 32>}, {pipeline_mode = #tpu.pipeline_mode<synchronous>, transform_indices = @transform_2, window_bounds = array<i64: 1, 28>}, {pipeline_mode = #tpu.pipeline_mode<synchronous>, transform_indices = @transform_3, window_bounds = array<i64: 1, 32>}, {transform_indices = @transform_4, window_bounds = array<i64: 8, 1>}, {transform_indices = @transform_5, window_bounds = array<i64: 8, 1>}]} {
    %c0 = arith.constant 0 : index
    %c0_0 = arith.constant 0 : index
    %0 = vector.load %arg3[%c0, %c0_0] : memref<1x28xf32, #tpu.memory_space<vmem>>, vector<1x28xf32>
    %c0_1 = arith.constant 0 : index
    %c0_2 = arith.constant 0 : index
    %1 = vector.load %arg4[%c0_1, %c0_2] : memref<1x32xf32, #tpu.memory_space<vmem>>, vector<1x32xf32>
    %c0_3 = arith.constant 0 : index
    %c0_4 = arith.constant 0 : index
    %2 = vector.load %arg1[%c0_3, %c0_4] : memref<8x28xf32, #tpu.memory_space<vmem>>, vector<8x28xf32>
    %c0_5 = arith.constant 0 : index
    %c0_6 = arith.constant 0 : index
    %3 = vector.load %arg2[%c0_5, %c0_6] : memref<8x32xf32, #tpu.memory_space<vmem>>, vector<8x32xf32>
    %4 = vector.broadcast %0 : vector<1x28xf32> to vector<8x28xf32>
    %5 = arith.mulf %2, %4 : vector<8x28xf32>
    %cst = arith.constant dense<0.000000e+00> : vector<8xf32>
    %6 = vector.multi_reduction <add>, %5, %cst [1] : vector<8x28xf32> to vector<8xf32>
    %7 = vector.shape_cast %6 : vector<8xf32> to vector<8x1xf32>
    %c0_7 = arith.constant 0 : index
    %c0_8 = arith.constant 0 : index
    %8 = vector.load %arg5[%c0_7, %c0_8] : memref<8x1xf32, #tpu.memory_space<vmem>>, vector<8x1xf32>
    tpu.vector_store %arg5[%c0_7, %c0_8], %7 {strides = array<i32>} : memref<8x1xf32, #tpu.memory_space<vmem>>, vector<8x1xf32>,
    %9 = vector.broadcast %1 : vector<1x32xf32> to vector<8x32xf32>
    %10 = arith.mulf %3, %9 : vector<8x32xf32>
    %cst_9 = arith.constant dense<0.000000e+00> : vector<8xf32>
    %11 = vector.multi_reduction <add>, %10, %cst_9 [1] : vector<8x32xf32> to vector<8xf32>
    %12 = vector.shape_cast %11 : vector<8xf32> to vector<8x1xf32>
    %c0_10 = arith.constant 0 : index
    %c0_11 = arith.constant 0 : index
    %13 = vector.load %arg6[%c0_10, %c0_11] : memref<8x1xf32, #tpu.memory_space<vmem>>, vector<8x1xf32>
    tpu.vector_store %arg6[%c0_10, %c0_11], %12 {strides = array<i32>} : memref<8x1xf32, #tpu.memory_space<vmem>>, vector<8x1xf32>,
    return
  }
  func.func @transform_0(%arg0: i32) -> (i32, i32) {
    %c0_i32 = arith.constant 0 : i32
    %c0_i32_0 = arith.constant 0 : i32
    return %arg0, %c0_i32 : i32, i32
  }
  func.func @transform_1(%arg0: i32) -> (i32, i32) {
    %c0_i32 = arith.constant 0 : i32
    %c0_i32_0 = arith.constant 0 : i32
    return %arg0, %c0_i32 : i32, i32
  }
  func.func @transform_2(%arg0: i32) -> (i32, i32) {
    %c0_i32 = arith.constant 0 : i32
    %c0_i32_0 = arith.constant 0 : i32
    %c0_i32_1 = arith.constant 0 : i32
    return %c0_i32, %c0_i32_0 : i32, i32
  }
  func.func @transform_3(%arg0: i32) -> (i32, i32) {
    %c0_i32 = arith.constant 0 : i32
    %c0_i32_0 = arith.constant 0 : i32
    %c0_i32_1 = arith.constant 0 : i32
    return %c0_i32, %c0_i32_0 : i32, i32
  }
  func.func @transform_4(%arg0: i32) -> (i32, i32) {
    %c0_i32 = arith.constant 0 : i32
    %c0_i32_0 = arith.constant 0 : i32
    return %arg0, %c0_i32 : i32, i32
  }
  func.func @transform_5(%arg0: i32) -> (i32, i32) {
    %c0_i32 = arith.constant 0 : i32
    %c0_i32_0 = arith.constant 0 : i32
    return %arg0, %c0_i32 : i32, i32
  }
}

</mosaic_0001>

<bundles_post_ra>
// kernel: tpu_custom_call.1
= control target key start
LH: loop header
LB: loop body
LE: loop exit
PB: predicated region body
PF: predicated region fallthrough
CT: control target
= control target key end

     0   :  { %11 = vsyncpa [#allocation3], 0  ;;  %s186_s0 = inlined_call_operand.hbm [shape: f32[8,28], index: 0, kind: input, shape index: {}]   ;;  %s187_s1 = inlined_call_operand.hbm [shape: f32[8,32], index: 1, kind: input, shape index: {}]   ;;  %s188_s2 = inlined_call_operand.vmem [shape: f32[1,28], index: 2, kind: input, shape index: {}]   ;;  %s189_s3 = inlined_call_operand.vmem [shape: f32[1,32], index: 3, kind: input, shape index: {}]   ;;  %s190_s4 = inlined_call_operand.vmem [shape: f32[8,1], index: 4, kind: output, shape index: {0}]   ;;  %s191_s5 = inlined_call_operand.vmem [shape: f32[8,1], index: 5, kind: output, shape index: {1}]  }
   0x1   :  { %s18_s20 = sshll.u32 %s186_s0, 4  ;;  %s19_s20 = int_to_ptr.hbm [resolvable:$true] %s18_s20 }
   0x2   :  { %12 = vsyncpa [#allocation5], 0  ;;  %s136_s21 = smov [#allocation2]   ;;  %s29_s25 = sshll.u32 %s187_s1, 4  ;;  %s30_s25 = int_to_ptr.hbm [resolvable:$true] %s29_s25 }
   0x3   :  { %s20_s22 = sshll.u32 %s136_s21, 4  ;;  %s137_s26 = smov [#allocation4]   ;;  %s21_s22 = int_to_ptr.vmem [resolvable:$true] %s20_s22 }
   0x4   :  { %23 = dma.hbm_to_vmem [thread:$0]  %s19_s20, 128, %s21_s22, [#allocation3]  }
   0x5   :  { %s31_s27 = sshll.u32 %s137_s26, 4  ;;  %s32_s27 = int_to_ptr.vmem [resolvable:$true] %s31_s27 }
   0x6   :  { %34 = dma.hbm_to_vmem [thread:$0]  %s30_s25, 128, %s32_s27, [#allocation5]  }
   0x7   :  { %132 = dma.done.wait [#allocation3], 128  }
   0x8   :  { %133 = vsyncadd [#allocation3], 4294967168 }
   0x9   :  { %134 = dma.done.wait [#allocation5], 128  }
   0xa   :  { %135 = vsyncadd [#allocation5], 4294967168  ;;  %v49_v0 = vld [vmem:[#allocation2] sm:$0xff]  ;;  %vm55_vm0 = vcmask 228352   ;;  %v50_v4 = vld [vmem:[#allocation4] sm:$0xff]  ;;  %vm65_vm1 = vcmask 261120  }
   0xb   :  { %v82_v1 = vld [vmem:[%s188_s2] ss:$0 sm:$0xff]  ;;  %vm59_vm2 = vcmask 7168  }
   0xc   :  { %v54_v2 = vmul.f32 %v82_v1, %v49_v0  ;;  %v83_v3 = vld [vmem:[%s189_s3] ss:$0 sm:$0xff] }
   0xd   :  { %v64_v6 = vmul.f32 %v83_v3, %v50_v4 }
   0xe   :  { %v56_v5 = vsel %vm55_vm0, %v54_v2, 0.0 }
   0xf   :  { %57 = vadd.xlane.f32.xlu0 %v56_v5  ;;  %v66_v7 = vsel %vm65_vm1, %v64_v6, 0.0 }
  0x17   :  { %67 = vadd.xlane.f32.xlu0 %v66_v7 }
  0x82   :  { %v58_v8 = vpop.xlane.xlu0 %57 }
  0x83   :  { %60 = vst.msk [vmem:[%s190_s4] sm:$0xff] %vm59_vm2, %v58_v8 }
  0x8a   :  { %v68_v9 = vpop.xlane.xlu0 %67 }
  0x8b   :  { %69 = vst.msk [vmem:[%s191_s5] sm:$0xff] %vm59_vm2, %v68_v9 }
  0x8c   :  { %78 = vsyncpa [#allocation3], 1 }
  0x8d   :  { %79 = vsyncpa [#allocation5], 1 }

</bundles_post_ra>
